<compile_context>
chip_gen: v6e
topology: v6e:2x2x1
jax: 0.10.0
libtpu: 0.0.40
codegen_flags: <defaults>
</compile_context>

<pallas_src>
import jax
import jax.numpy as jnp
from jax.experimental import pallas as pl
from jax.experimental.pallas import tpu as pltpu

_LANES = 128
_SUB_MULT = {4: 8, 2: 16, 1: 32}  # sublane packing per itemsize


def _detect_tpu():
    """Best-effort (tensorcores_per_chip, per_block_byte_budget)."""
    kind = ""
    try:
        devs = jax.devices()
        if devs and getattr(devs[0], "platform", "") == "tpu":
            kind = (getattr(devs[0], "device_kind", "") or "").lower()
    except Exception:
        pass
    # Single-TensorCore generations: v5e / v6e (Trillium).
    if any(t in kind for t in ("v5e", "v5 lite", "v5litepod", "v6e", "v6 lite", "trillium")):
        return 1, 4 << 20
    # v7x: 2 TCs/chip, 64 MiB VMEM/TC, ~3.2 TB/s HBM -> bigger blocks pay off.
    if "v7" in kind or "7x" in kind:
        return 2, 8 << 20
    # Unknown / other (v4, v5p, future): assume megacore, keep the 4 MiB knee.
    return 2, 4 << 20


_NUM_TC, _BLOCK_BYTE_BUDGET = _detect_tpu()


def _h_swish_kernel(x_ref, o_ref):
    x = x_ref[...]
    xf = x.astype(jnp.float32)
    # relu6(x + 3) = clamp(x + 3, 0, 6); f32 internally, cast once on store.
    r6 = jnp.clip(xf + 3.0, 0.0, 6.0)
    o_ref[...] = (xf * r6 * (1.0 / 6.0)).astype(o_ref.dtype)


def _h_swish_jnp(x):
    xf = x.astype(jnp.float32)
    return (xf * jnp.clip(xf + 3.0, 0.0, 6.0) * (1.0 / 6.0)).astype(x.dtype)


def _pallas_h_swish_2d(slab):
    rows, lanes = slab.shape
    itemsize = slab.dtype.itemsize
    sub_mult = _SUB_MULT.get(itemsize, 8)

    # --- block rows from a byte budget (dtype-independent DMA size) ---------
    row_bytes = lanes * itemsize
    budget_rows = max(sub_mult, (_BLOCK_BYTE_BUDGET // row_bytes) // sub_mult * sub_mult)

    if _NUM_TC > 1:
        # >= 2 grid steps per TensorCore (when rows permit) so each core
        # pipelines its blocks; still capped by the byte budget.
        min_steps = 2 * _NUM_TC
        per_step = -(-pl.cdiv(rows, min_steps) // sub_mult) * sub_mult
        block_rows = min(budget_rows, per_step)
    else:
        # Single TC: no megacore sharding; one block when it fits the budget.
        block_rows = min(budget_rows, rows)
    block_rows = max(sub_mult, min(block_rows, rows))

    grid = (pl.cdiv(rows, block_rows),)  # ragged last block is masked by Pallas

    block_bytes = block_rows * lanes * itemsize
    # input + output, each double-buffered, plus headroom; <= ~36 MiB even with
    # the 8 MiB v7x budget (under the 64 MiB physical VMEM).
    vmem_limit = max(16 << 20, 4 * block_bytes + (4 << 20))

    cost = pl.CostEstimate(
        flops=5 * rows * lanes,
        transcendentals=0,
        bytes_accessed=2 * rows * lanes * itemsize,
    )

    return pl.pallas_call(
        _h_swish_kernel,
        out_shape=jax.ShapeDtypeStruct((rows, lanes), slab.dtype),
        grid_spec=pltpu.PrefetchScalarGridSpec(
            num_scalar_prefetch=0,
            grid=grid,
            in_specs=[pl.BlockSpec((block_rows, lanes), lambda i: (i, 0))],
            out_specs=pl.BlockSpec((block_rows, lanes), lambda i: (i, 0)),
        ),
        compiler_params=pltpu.CompilerParams(
            dimension_semantics=("parallel",),
            vmem_limit_bytes=vmem_limit,
        ),
        cost_estimate=cost,
    )(slab)


@jax.jit
def h_swish(x: jax.Array) -> jax.Array:
    """Elementwise hard-swish matching torch: x * relu6(x + 3) / 6."""
    orig_shape = x.shape
    n = x.size
    itemsize = x.dtype.itemsize
    sub_mult = _SUB_MULT.get(itemsize, 8)
    tile = sub_mult * _LANES

    if n == 0 or n % tile != 0:
        # Ragged / tiny sizes: XLA's fused elementwise is already ~roofline at
        # 2N bytes; avoids the old Pallas-main + concat tail (~2x HBM traffic).
        return _h_swish_jnp(x)

    # Widen the lane dimension when the element count allows (fewer / wider
    # store rows and DMA descriptors); 128 is the floor for unmasked stores.
    lanes = _LANES
    for cand in (2048, 1024, 512, 256):
        if n % cand == 0 and (n // cand) % sub_mult == 0:
            lanes = cand
            break

    slab = x.reshape(n // lanes, lanes)  # zero-copy under jit
    return _pallas_h_swish_2d(slab).reshape(orig_shape)


if __name__ == "__main__":
    key = jax.random.PRNGKey(0)

    # Primary check: f32, shape implied by the module's typical use.
    x = jax.random.normal(key, (2, 4, 16, 16), dtype=jnp.float32) * 4.0
    y = jax.block_until_ready(h_swish(x))
    y_ref = x * jnp.clip(x + 3.0, 0.0, 6.0) / 6.0
    assert y.shape == x.shape and y.dtype == x.dtype
    assert jnp.allclose(y, y_ref, atol=1e-6, rtol=1e-6)

    # Ragged bf16 input -> whole-tensor jnp fallback path.
    x2 = jax.random.normal(jax.random.PRNGKey(1), (2, 8, 32, 33),
                           dtype=jnp.bfloat16) * 4.0
    y2 = jax.block_until_ready(h_swish(x2))
    x2f = x2.astype(jnp.float32)
    y2_ref = x2f * jnp.clip(x2f + 3.0, 0.0, 6.0) / 6.0
    assert y2.shape == x2.shape and y2.dtype == x2.dtype
    assert jnp.allclose(y2.astype(jnp.float32), y2_ref, atol=5e-2, rtol=5e-2)

    # Aligned bf16 input -> Pallas path with bf16 I/O, f32 internal math.
    x3 = jax.random.normal(jax.random.PRNGKey(2), (4, 16, 32, 32),
                           dtype=jnp.bfloat16) * 4.0
    y3 = jax.block_until_ready(h_swish(x3))
    x3f = x3.astype(jnp.float32)
    y3_ref = x3f * jnp.clip(x3f + 3.0, 0.0, 6.0) / 6.0
    assert y3.shape == x3.shape and y3.dtype == x3.dtype
    assert jnp.allclose(y3.astype(jnp.float32), y3_ref, atol=2e-2, rtol=2e-2)

    print("KERNEL_OK")
</pallas_src>

<mosaic_0001>
module attributes {stable_mosaic.version = 11 : i64} {
  func.func @_h_swish_kernel(%arg0: i32, %arg1: memref<8x256xf32, #tpu.memory_space<vmem>>, %arg2: memref<8x256xf32, #tpu.memory_space<vmem>>) attributes {dimension_semantics = [#tpu.dimension_semantics<parallel>], iteration_bounds = array<i64: 1>, scalar_prefetch = 0 : i64, scratch_operands = 0 : i64, tpu.core_type = #tpu.core_type<tc>, window_params = [{transform_indices = @transform_0, window_bounds = array<i64: 8, 256>}, {transform_indices = @transform_1, window_bounds = array<i64: 8, 256>}]} {
    %c0 = arith.constant 0 : index
    %c0_0 = arith.constant 0 : index
    %0 = vector.load %arg1[%c0, %c0_0] : memref<8x256xf32, #tpu.memory_space<vmem>>, vector<8x256xf32>
    %cst = arith.constant 3.000000e+00 : f32
    %1 = vector.broadcast %cst : f32 to vector<8x256xf32>
    %2 = arith.addf %0, %1 : vector<8x256xf32>
    %cst_1 = arith.constant 0.000000e+00 : f32
    %cst_2 = arith.constant 6.000000e+00 : f32
    %3 = vector.broadcast %cst_1 : f32 to vector<8x256xf32>
    %4 = arith.maximumf %3, %2 : vector<8x256xf32>
    %5 = vector.broadcast %cst_2 : f32 to vector<8x256xf32>
    %6 = arith.minimumf %5, %4 : vector<8x256xf32>
    %7 = arith.mulf %0, %6 : vector<8x256xf32>
    %cst_3 = arith.constant 0.166666672 : f32
    %8 = vector.broadcast %cst_3 : f32 to vector<8x256xf32>
    %9 = arith.mulf %7, %8 : vector<8x256xf32>
    %c0_4 = arith.constant 0 : index
    %c0_5 = arith.constant 0 : index
    %10 = vector.load %arg2[%c0_4, %c0_5] : memref<8x256xf32, #tpu.memory_space<vmem>>, vector<8x256xf32>
    tpu.vector_store %arg2[%c0_4, %c0_5], %9 {strides = array<i32>} : memref<8x256xf32, #tpu.memory_space<vmem>>, vector<8x256xf32>,
    return
  }
  func.func @transform_0(%arg0: i32) -> (i32, i32) {
    %c0_i32 = arith.constant 0 : i32
    %c0_i32_0 = arith.constant 0 : i32
    return %arg0, %c0_i32 : i32, i32
  }
  func.func @transform_1(%arg0: i32) -> (i32, i32) {
    %c0_i32 = arith.constant 0 : i32
    %c0_i32_0 = arith.constant 0 : i32
    return %arg0, %c0_i32 : i32, i32
  }
}

</mosaic_0001>

<bundles_post_ra>
// kernel: h_swish.1
= control target key start
LH: loop header
LB: loop body
LE: loop exit
PB: predicated region body
PF: predicated region fallthrough
CT: control target
= control target key end

     0   :  { %s48_s0 = inlined_call_operand.vmem [shape: f32[8,256], index: 0, kind: input, shape index: {}]   ;;  %s49_s1 = inlined_call_operand.vmem [shape: f32[8,256], index: 1, kind: output, shape index: {}]  }
   0x1   :  { %v8_v0 = vld [vmem:[%s48_s0] sm:$0xff]  ;;  %v9_v1 = vld [vmem:[%s48_s0 + $0x8] sm:$0xff] }
   0x2   :  { %v10_v2 = vadd.f32 3.0, %v8_v0  ;;  %v11_v3 = vadd.f32 3.0, %v9_v1 }
   0x4   :  { %v12_v4 = vmax.f32 %v10_v2, 0.0  ;;  %v13_v5 = vmax.f32 %v11_v3, 0.0 }
   0x6   :  { %v14_v6 = vmin.f32 %v12_v4, 6.0  ;;  %v15_v7 = vmin.f32 %v13_v5, 6.0 }
   0x8   :  { %v16_v8 = vmul.f32 %v14_v6, %v8_v0  ;;  %v17_v9 = vmul.f32 %v15_v7, %v9_v1 }
   0xa   :  { %v18_v10 = vmul.f32 0.16666667, %v16_v8  ;;  %v19_v11 = vmul.f32 0.16666667, %v17_v9 }
   0xc   :  { %20 = vst [vmem:[%s49_s1] sm:$0xff] %v18_v10  ;;  %21 = vst [vmem:[%s49_s1 + $0x8] sm:$0xff] %v19_v11 }

</bundles_post_ra>
